<compile_context>
chip_gen: v5e
topology: v5e:2x2
jax: 0.10.0
libtpu: 0.0.40
codegen_flags: <defaults>
</compile_context>

<pallas_src>
import functools

import jax
import jax.numpy as jnp
from jax.experimental import pallas as pl
from jax.experimental.pallas import tpu as pltpu

LANE = 128      # lane width (last dim)
SUBLANE = 8     # f32 sublane count (second-to-last dim)


def _round_up(n, m):
    return (n + m - 1) // m * m


def mlp_kernel(x_ref, w1_ref, b1_ref, w2_ref, b2_ref, o_ref):
    # layer1: x @ W1 + b1   (MXU, f32 accumulate)
    h = jnp.dot(x_ref[...], w1_ref[...], preferred_element_type=jnp.float32)
    h = h + b1_ref[...]                     # (1, hid_p) broadcasts over batch
    # sigmoid activation: exp/reciprocal issue on the otherwise-idle EUP slot
    h = jax.nn.sigmoid(h)
    # layer2: h @ W2 + b2
    out = jnp.dot(h, w2_ref[...], preferred_element_type=jnp.float32)
    o_ref[...] = out + b2_ref[...]          # output stays f32, lane-dense store


def pad_params(w1, b1, w2, b2):
    """Pad weights/biases once to (8,128)-aligned shapes (zero padding keeps
    the math identical: padded hidden lanes produce sigmoid(0)=0.5 but hit
    zero rows of W2, so they contribute nothing to the output)."""
    in_size, hid = w1.shape
    out_size = w2.shape[1]
    in_p = _round_up(in_size, LANE)
    hid_p = _round_up(hid, LANE)
    out_p = _round_up(out_size, LANE)
    w1p = jnp.pad(w1, ((0, in_p - in_size), (0, hid_p - hid)))
    b1p = jnp.pad(b1, ((0, 0), (0, hid_p - hid)))
    w2p = jnp.pad(w2, ((0, hid_p - hid), (0, out_p - out_size)))
    b2p = jnp.pad(b2, ((0, 0), (0, out_p - out_size)))
    return w1p, b1p, w2p, b2p


@functools.partial(jax.jit, static_argnames=("out_size", "tb"))
def neural_network_forward(x, w1p, b1p, w2p, b2p, *, out_size, tb=512):
    """x: (B, input_size); w1p/b1p/w2p/b2p: pre-padded params from pad_params.
    Returns (B, out_size) f32 logits."""
    B, in_size = x.shape
    in_p = w1p.shape[0]
    hid_p = w1p.shape[1]
    out_p = w2p.shape[1]

    # Batch tile: multiple of 8 sublanes; clamp to the (padded) batch so tiny
    # batches still form a single full block.
    TB = min(tb, _round_up(B, SUBLANE))
    B_p = _round_up(B, TB)

    # Pad activations to the aligned slab (zero rows are sliced off at the end).
    xp = jnp.pad(x, ((0, B_p - B), (0, in_p - in_size)))

    grid = (B_p // TB,)

    out = pl.pallas_call(
        mlp_kernel,
        out_shape=jax.ShapeDtypeStruct((B_p, out_p), jnp.float32),
        grid_spec=pltpu.PrefetchScalarGridSpec(
            num_scalar_prefetch=0,
            grid=grid,
            in_specs=[
                # x: tiled over batch, auto-pipelined HBM->VMEM per grid step
                pl.BlockSpec((TB, in_p), lambda i: (i, 0)),
                # weights/biases: one full block, resident across all steps
                pl.BlockSpec((in_p, hid_p), lambda i: (0, 0)),
                pl.BlockSpec((1, hid_p), lambda i: (0, 0)),
                pl.BlockSpec((hid_p, out_p), lambda i: (0, 0)),
                pl.BlockSpec((1, out_p), lambda i: (0, 0)),
            ],
            out_specs=pl.BlockSpec((TB, out_p), lambda i: (i, 0)),
        ),
        compiler_params=pltpu.CompilerParams(
            # batch axis is independent -> shard across TensorCores on v7x
            dimension_semantics=("parallel",),
        ),
    )(xp, w1p, b1p, w2p, b2p)

    # Slice the padding back off (batch rows + output lanes).
    return out[:B, :out_size]


def init_params(key, input_size, hidden_size, output_size):
    """Deterministic init mimicking nn.Linear (uniform(-1/sqrt(fan_in), +)).
    Weights returned already transposed to (in, out)."""
    k1, k2, k3, k4 = jax.random.split(key, 4)
    bound1 = 1.0 / jnp.sqrt(input_size)
    bound2 = 1.0 / jnp.sqrt(hidden_size)
    w1 = jax.random.uniform(k1, (input_size, hidden_size), jnp.float32,
                            -bound1, bound1)
    b1 = jax.random.uniform(k2, (1, hidden_size), jnp.float32, -bound1, bound1)
    w2 = jax.random.uniform(k3, (hidden_size, output_size), jnp.float32,
                            -bound2, bound2)
    b2 = jax.random.uniform(k4, (1, output_size), jnp.float32, -bound2, bound2)
    return w1, b1, w2, b2


if __name__ == "__main__":
    # Shapes implied by the module: iris-like data -> input_size=4,
    # hidden_size=6 (as in the source), output_size=3 classes, batch=8.
    batch, input_size, hidden_size, output_size = 8, 4, 6, 3

    key = jax.random.PRNGKey(0)
    kx, kp = jax.random.split(key)
    x = jax.random.normal(kx, (batch, input_size), jnp.float32)
    w1, b1, w2, b2 = init_params(kp, input_size, hidden_size, output_size)

    # Pad parameters once (not per call).
    w1p, b1p, w2p, b2p = pad_params(w1, b1, w2, b2)

    out = neural_network_forward(x, w1p, b1p, w2p, b2p,
                                 out_size=output_size)
    jax.block_until_ready(out)

    # Reference check in plain JAX (same math as the PyTorch forward).
    ref = jax.nn.sigmoid(x @ w1 + b1) @ w2 + b2
    assert out.shape == (batch, output_size)
    assert jnp.allclose(out, ref, atol=1e-5, rtol=1e-5)

    print("KERNEL_OK")
</pallas_src>

<mosaic_0001>
module attributes {stable_mosaic.version = 11 : i64} {
  func.func @mlp_kernel(%arg0: i32, %arg1: memref<8x128xf32, #tpu.memory_space<vmem>>, %arg2: memref<128x128xf32, #tpu.memory_space<vmem>>, %arg3: memref<1x128xf32, #tpu.memory_space<vmem>>, %arg4: memref<128x128xf32, #tpu.memory_space<vmem>>, %arg5: memref<1x128xf32, #tpu.memory_space<vmem>>, %arg6: memref<8x128xf32, #tpu.memory_space<vmem>>) attributes {dimension_semantics = [#tpu.dimension_semantics<parallel>], iteration_bounds = array<i64: 1>, scalar_prefetch = 0 : i64, scratch_operands = 0 : i64, tpu.core_type = #tpu.core_type<tc>, window_params = [{transform_indices = @transform_0, window_bounds = array<i64: 8, 128>}, {pipeline_mode = #tpu.pipeline_mode<synchronous>, transform_indices = @transform_1, window_bounds = array<i64: 128, 128>}, {pipeline_mode = #tpu.pipeline_mode<synchronous>, transform_indices = @transform_2, window_bounds = array<i64: 1, 128>}, {pipeline_mode = #tpu.pipeline_mode<synchronous>, transform_indices = @transform_3, window_bounds = array<i64: 128, 128>}, {pipeline_mode = #tpu.pipeline_mode<synchronous>, transform_indices = @transform_4, window_bounds = array<i64: 1, 128>}, {transform_indices = @transform_5, window_bounds = array<i64: 8, 128>}]} {
    %c0 = arith.constant 0 : index
    %c0_0 = arith.constant 0 : index
    %0 = vector.load %arg1[%c0, %c0_0] : memref<8x128xf32, #tpu.memory_space<vmem>>, vector<8x128xf32>
    %c0_1 = arith.constant 0 : index
    %c0_2 = arith.constant 0 : index
    %1 = vector.load %arg2[%c0_1, %c0_2] : memref<128x128xf32, #tpu.memory_space<vmem>>, vector<128x128xf32>
    %cst = arith.constant dense<0.000000e+00> : vector<8x128xf32>
    %2 = tpu.matmul %0, %1, %cst {dimension_numbers = #tpu.dot_dimension_numbers<[1], [0], [0], [1], [0, 0, 1, 1], [], []>} : vector<8x128xf32>, vector<128x128xf32>, vector<8x128xf32> -> vector<8x128xf32>
    %c0_3 = arith.constant 0 : index
    %c0_4 = arith.constant 0 : index
    %3 = vector.load %arg3[%c0_3, %c0_4] : memref<1x128xf32, #tpu.memory_space<vmem>>, vector<1x128xf32>
    %4 = vector.broadcast %3 : vector<1x128xf32> to vector<8x128xf32>
    %5 = arith.addf %2, %4 : vector<8x128xf32>
    %6 = arith.negf %5 : vector<8x128xf32>
    %7 = math.exp %6 : vector<8x128xf32>
    %cst_5 = arith.constant 1.000000e+00 : f32
    %8 = vector.broadcast %cst_5 : f32 to vector<8x128xf32>
    %9 = arith.addf %8, %7 : vector<8x128xf32>
    %10 = arith.divf %8, %9 : vector<8x128xf32>
    %c0_6 = arith.constant 0 : index
    %c0_7 = arith.constant 0 : index
    %11 = vector.load %arg4[%c0_6, %c0_7] : memref<128x128xf32, #tpu.memory_space<vmem>>, vector<128x128xf32>
    %cst_8 = arith.constant dense<0.000000e+00> : vector<8x128xf32>
    %12 = tpu.matmul %10, %11, %cst_8 {dimension_numbers = #tpu.dot_dimension_numbers<[1], [0], [0], [1], [0, 0, 1, 1], [], []>} : vector<8x128xf32>, vector<128x128xf32>, vector<8x128xf32> -> vector<8x128xf32>
    %c0_9 = arith.constant 0 : index
    %c0_10 = arith.constant 0 : index
    %13 = vector.load %arg5[%c0_9, %c0_10] : memref<1x128xf32, #tpu.memory_space<vmem>>, vector<1x128xf32>
    %14 = vector.broadcast %13 : vector<1x128xf32> to vector<8x128xf32>
    %15 = arith.addf %12, %14 : vector<8x128xf32>
    %c0_11 = arith.constant 0 : index
    %c0_12 = arith.constant 0 : index
    %16 = vector.load %arg6[%c0_11, %c0_12] : memref<8x128xf32, #tpu.memory_space<vmem>>, vector<8x128xf32>
    tpu.vector_store %arg6[%c0_11, %c0_12], %15 {strides = array<i32>} : memref<8x128xf32, #tpu.memory_space<vmem>>, vector<8x128xf32>,
    return
  }
  func.func @transform_0(%arg0: i32) -> (i32, i32) {
    %c0_i32 = arith.constant 0 : i32
    %c0_i32_0 = arith.constant 0 : i32
    return %arg0, %c0_i32 : i32, i32
  }
  func.func @transform_1(%arg0: i32) -> (i32, i32) {
    %c0_i32 = arith.constant 0 : i32
    %c0_i32_0 = arith.constant 0 : i32
    %c0_i32_1 = arith.constant 0 : i32
    return %c0_i32, %c0_i32_0 : i32, i32
  }
  func.func @transform_2(%arg0: i32) -> (i32, i32) {
    %c0_i32 = arith.constant 0 : i32
    %c0_i32_0 = arith.constant 0 : i32
    %c0_i32_1 = arith.constant 0 : i32
    return %c0_i32, %c0_i32_0 : i32, i32
  }
  func.func @transform_3(%arg0: i32) -> (i32, i32) {
    %c0_i32 = arith.constant 0 : i32
    %c0_i32_0 = arith.constant 0 : i32
    %c0_i32_1 = arith.constant 0 : i32
    return %c0_i32, %c0_i32_0 : i32, i32
  }
  func.func @transform_4(%arg0: i32) -> (i32, i32) {
    %c0_i32 = arith.constant 0 : i32
    %c0_i32_0 = arith.constant 0 : i32
    %c0_i32_1 = arith.constant 0 : i32
    return %c0_i32, %c0_i32_0 : i32, i32
  }
  func.func @transform_5(%arg0: i32) -> (i32, i32) {
    %c0_i32 = arith.constant 0 : i32
    %c0_i32_0 = arith.constant 0 : i32
    return %arg0, %c0_i32 : i32, i32
  }
}

</mosaic_0001>

<bundles_post_ra>
// kernel: neural_network_forward.1
= control target key start
LH: loop header
LB: loop body
LE: loop exit
PB: predicated region body
PF: predicated region fallthrough
CT: control target
= control target key end

     0   :  { %10 = vsyncpa [#allocation3], 0  ;;  %s274_s0 = inlined_call_operand.vmem [shape: f32[8,128], index: 0, kind: input, shape index: {}]   ;;  %s275_s1 = inlined_call_operand.hbm [shape: f32[128,128], index: 1, kind: input, shape index: {}]   ;;  %s276_s2 = inlined_call_operand.vmem [shape: f32[1,128], index: 2, kind: input, shape index: {}]   ;;  %s277_s3 = inlined_call_operand.hbm [shape: f32[128,128], index: 3, kind: input, shape index: {}]   ;;  %s278_s4 = inlined_call_operand.vmem [shape: f32[1,128], index: 4, kind: input, shape index: {}]   ;;  %s279_s5 = inlined_call_operand.vmem [shape: f32[8,128], index: 5, kind: output, shape index: {}]  }
   0x1   :  { %s18_s20 = sshll.u32 %s275_s1, 4  ;;  %s19_s20 = int_to_ptr.hbm [resolvable:$true] %s18_s20 }
   0x2   :  { %11 = vsyncpa [#allocation5], 0  ;;  %s222_s21 = smov [#allocation2]   ;;  %s33_s25 = sshll.u32 %s277_s3, 4  ;;  %s34_s25 = int_to_ptr.hbm [resolvable:$true] %s33_s25 }
   0x3   :  { %s20_s22 = sshll.u32 %s222_s21, 4  ;;  %s223_s26 = smov 128   ;;  %s21_s22 = int_to_ptr.vmem [resolvable:$true] %s20_s22 }
   0x4   :  { %s224_s27 = smov 8   ;;  %s225_s28 = smov [#allocation4]  }
   0x5   :  { %26 = dma.hbm_to_vmem [thread:$0]  %s19_s20, 2048, %s21_s22, [#allocation3], %s223_s26, %s223_s26, %s224_s27  }
   0x6   :  { %s35_s29 = sshll.u32 %s225_s28, 4  ;;  %s36_s29 = int_to_ptr.vmem [resolvable:$true] %s35_s29 }
   0x7   :  { %41 = dma.hbm_to_vmem [thread:$0]  %s34_s25, 2048, %s36_s29, [#allocation5], %s223_s26, %s223_s26, %s224_s27  }
   0x8   :  { %218 = dma.done.wait [#allocation3], 2048  }
   0x9   :  { %219 = vsyncadd [#allocation3], 4294965248 }
   0xa   :  { %220 = dma.done.wait [#allocation5], 2048  }
   0xb   :  { %221 = vsyncadd [#allocation5], 4294965248  ;;  %v68_v0 = vld [vmem:[#allocation2 + $0x78] sm:$0xff]  ;;  %v67_v1 = vld [vmem:[#allocation2 + $0x70] sm:$0xff] }
   0xc   :  { %73 = vmatpush.msra.mxu0 %v68_v0  ;;  %v66_v2 = vld [vmem:[#allocation2 + $0x68] sm:$0xff]  ;;  %v65_v3 = vld [vmem:[#allocation2 + $0x60] sm:$0xff]  ;;  %v64_v4 = vld [vmem:[#allocation2 + $0x58] sm:$0xff] }
   0xd   :  { %v63_v5 = vld [vmem:[#allocation2 + $0x50] sm:$0xff]  ;;  %v62_v6 = vld [vmem:[#allocation2 + $0x48] sm:$0xff]  ;;  %v61_v7 = vld [vmem:[#allocation2 + $0x40] sm:$0xff] }
   0xe   :  { %74 = vmatpush.msra.mxu0 %v67_v1  ;;  %v60_v8 = vld [vmem:[#allocation2 + $0x38] sm:$0xff]  ;;  %v59_v9 = vld [vmem:[#allocation2 + $0x30] sm:$0xff]  ;;  %v58_v10 = vld [vmem:[#allocation2 + $0x28] sm:$0xff] }
   0xf   :  { %v57_v11 = vld [vmem:[#allocation2 + $0x20] sm:$0xff]  ;;  %v56_v12 = vld [vmem:[#allocation2 + $0x18] sm:$0xff]  ;;  %v55_v13 = vld [vmem:[#allocation2 + $0x10] sm:$0xff] }
  0x10   :  { %75 = vmatpush.msra.mxu0 %v66_v2  ;;  %v54_v14 = vld [vmem:[#allocation2 + $0x8] sm:$0xff]  ;;  %v53_v15 = vld [vmem:[#allocation2] sm:$0xff]  ;;  %v127_v17 = vld [vmem:[#allocation4 + $0x78] sm:$0xff] }
  0x11   :  { %v52_v16 = vld [vmem:[%s274_s0] sm:$0xff]  ;;  %132 = vmatpush.msra.mxu1 %v127_v17  ;;  %v126_v18 = vld [vmem:[#allocation4 + $0x70] sm:$0xff]  ;;  %v125_v19 = vld [vmem:[#allocation4 + $0x68] sm:$0xff] }
  0x12   :  { %76 = vmatpush.msra.mxu0 %v65_v3  ;;  %v124_v20 = vld [vmem:[#allocation4 + $0x60] sm:$0xff]  ;;  %v123_v21 = vld [vmem:[#allocation4 + $0x58] sm:$0xff]  ;;  %v122_v22 = vld [vmem:[#allocation4 + $0x50] sm:$0xff] }
  0x13   :  { %133 = vmatpush.msra.mxu1 %v126_v18  ;;  %v121_v23 = vld [vmem:[#allocation4 + $0x48] sm:$0xff]  ;;  %v120_v24 = vld [vmem:[#allocation4 + $0x40] sm:$0xff]  ;;  %v119_v25 = vld [vmem:[#allocation4 + $0x38] sm:$0xff] }
  0x14   :  { %77 = vmatpush.msra.mxu0 %v64_v4  ;;  %v118_v26 = vld [vmem:[#allocation4 + $0x30] sm:$0xff]  ;;  %v117_v27 = vld [vmem:[#allocation4 + $0x28] sm:$0xff]  ;;  %v116_v28 = vld [vmem:[#allocation4 + $0x20] sm:$0xff] }
  0x15   :  { %134 = vmatpush.msra.mxu1 %v125_v19  ;;  %v115_v29 = vld [vmem:[#allocation4 + $0x18] sm:$0xff]  ;;  %v114_v30 = vld [vmem:[#allocation4 + $0x10] sm:$0xff]  ;;  %v113_v31 = vld [vmem:[#allocation4 + $0x8] sm:$0xff] }
  0x16   :  { %78 = vmatpush.msra.mxu0 %v63_v5  ;;  %v112_v32 = vld [vmem:[#allocation4] sm:$0xff] }
  0x17   :  { %135 = vmatpush.msra.mxu1 %v124_v20  ;;  %v164_v33 = vld [vmem:[%s276_s2] ss:$0 sm:$0xff] }
  0x18   :  { %79 = vmatpush.msra.mxu0 %v62_v6  ;;  %v165_v49 = vld [vmem:[%s278_s4] ss:$0 sm:$0xff] }
  0x19   :  { %136 = vmatpush.msra.mxu1 %v123_v21 }
  0x1a   :  { %80 = vmatpush.msra.mxu0 %v61_v7 }
  0x1b   :  { %137 = vmatpush.msra.mxu1 %v122_v22 }
  0x1c   :  { %81 = vmatpush.msra.mxu0 %v60_v8 }
  0x1d   :  { %138 = vmatpush.msra.mxu1 %v121_v23 }
  0x1e   :  { %82 = vmatpush.msra.mxu0 %v59_v9 }
  0x1f   :  { %139 = vmatpush.msra.mxu1 %v120_v24 }
  0x20   :  { %83 = vmatpush.msra.mxu0 %v58_v10 }
  0x21   :  { %140 = vmatpush.msra.mxu1 %v119_v25 }
  0x22   :  { %84 = vmatpush.msra.mxu0 %v57_v11 }
  0x23   :  { %141 = vmatpush.msra.mxu1 %v118_v26 }
  0x24   :  { %85 = vmatpush.msra.mxu0 %v56_v12 }
  0x25   :  { %142 = vmatpush.msra.mxu1 %v117_v27 }
  0x26   :  { %86 = vmatpush.msra.mxu0 %v55_v13 }
  0x27   :  { %143 = vmatpush.msra.mxu1 %v116_v28 }
  0x28   :  { %87 = vmatpush.msra.mxu0 %v54_v14 }
  0x29   :  { %144 = vmatpush.msra.mxu1 %v115_v29 }
  0x2a   :  { %88 = vmatpush.msra.mxu0 %v53_v15 }
  0x2b   :  { %89 = vmatmul.f32.vlgmr.msra.gmra.mxu0 %v52_v16  ;;  %145 = vmatpush.msra.mxu1 %v114_v30 }
  0x2d   :  { %146 = vmatpush.msra.mxu1 %v113_v31 }
  0x2f   :  { %147 = vmatpush.msra.mxu1 %v112_v32 }
  0xa8   :  { %v90_v34 = vpop.f32.mrf.mxu0 }
  0xa9   :  { %v91_v35 = vadd.f32 %v164_v33, %v90_v34 }
  0xab   :  { %v159_v36 = vmul.f32 -1.442695, %v91_v35 }
  0xad   :  { %166 = vpow2.f32 %v159_v36 }
  0xb3   :  { %v167_v37 = vpop.eup %166 }
  0xb4   :  { %v96_v38 = vadd.f32 1.0, %v167_v37 }
  0xb6   :  { %168 = vrcp.f32 %v96_v38  ;;  %v108_v42 = vand.u32 2147483648, %v96_v38  ;;  %v106_v44 = vand.u32 2147483647, %v96_v38  ;;  %vm102_vm1 = vweird.f32 %v96_v38 }
  0xb8   :  { %v109_v46 = vor.u32 1.1754944e-38, %v108_v42  ;;  %vm107_vm3 = vcmp.eq.f32.partialorder %v106_v44, 8.507059e+37 }
  0xbc   :  { %v169_v39 = vpop.eup %168 }
  0xbd   :  { %v98_v40 = vmul.f32 %v169_v39, %v96_v38  ;;  %vm103_vm0 = vweird.f32 %v169_v39 }
  0xbe   :  { %vm104_vm2 = vmor %vm102_vm1, %vm103_vm0 }
  0xbf   :  { %v99_v41 = vsub.f32 1.0, %v98_v40 }
  0xc1   :  { %v100_v43 = vmul.f32 %v169_v39, %v99_v41 }
  0xc3   :  { %v101_v45 = vadd.f32 %v169_v39, %v100_v43 }
  0xc5   :  { %v105_v47 = vsel %vm104_vm2, %v169_v39, %v101_v45 }
  0xc6   :  { %v110_v48 = vsel %vm107_vm3, %v109_v46, %v105_v47 }
  0xc7   :  { %148 = vmatmul.f32.vlgmr.msra.gmra.mxu1 %v110_v48 }
 0x144   :  { %v149_v50 = vpop.f32.mrf.mxu1 }
 0x145   :  { %v150_v51 = vadd.f32 %v165_v49, %v149_v50 }
 0x147   :  { %152 = vst [vmem:[%s279_s5] sm:$0xff] %v150_v51 }
 0x148   :  { %157 = vsyncpa [#allocation3], 1 }
 0x149   :  { %158 = vsyncpa [#allocation5], 1 }

</bundles_post_ra>
